<compile_context>
chip_gen: v5e
topology: v5e:2x2
jax: 0.10.0
libtpu: 0.0.40
codegen_flags: <defaults>
</compile_context>

<pallas_src>
import math
import functools

import jax
import jax.numpy as jnp
from jax.experimental import pallas as pl
from jax.experimental.pallas import tpu as pltpu


def encoder_classifier_kernel(
    x_ref,      # (1, S, H)  f32  per-sample residual stream (embeddings)
    mask_ref,   # (1, 1, S)  f32  additive attention mask (0 valid / -1e9 pad)
    wqkv_ref,   # (H, 3H)    bf16 fused QKV, head-major columns, softmax scale folded into Q
    wo_ref,     # (H, H)     bf16 attention output projection
    w1_ref,     # (H, F)     bf16 FFN in
    w2_ref,     # (F, H)     bf16 FFN out
    vecs_ref,   # (10, 3H)   f32  packed small vectors (biases / LN params / classifier)
    out_ref,    # (1, 1, 1)  f32  sigmoid(logit) for this sample
    *, num_heads):
    S = x_ref.shape[1]
    H = x_ref.shape[2]
    F = w1_ref.shape[1]
    NH = num_heads
    HD = H // NH

    x = x_ref[0]                               # (S, H) f32

    # ---- unpack the small-vector slab (one DMA'd input instead of ten) ------
    vecs = vecs_ref[...]
    bqkv = vecs[0:1, :]                        # (1, 3H)  head-major, scale folded into q part
    b1   = vecs[1:2, :F]                       # (1, F)
    bo   = vecs[2:3, :H]
    g1   = vecs[3:4, :H]
    be1  = vecs[4:5, :H]
    b2   = vecs[5:6, :H]
    g2   = vecs[6:7, :H]
    be2  = vecs[7:8, :H]
    wfc  = vecs[8:9, :H]                       # (1, H) classifier weight row
    bfc  = vecs[9:10, 0:1]                     # (1, 1) classifier bias

    # ---- fused QKV projection: one (S,H) x (H,3H) bf16 MXU push -------------
    qkv = jnp.dot(x.astype(jnp.bfloat16), wqkv_ref[...],
                  preferred_element_type=jnp.float32) + bqkv       # (S, 3H) f32

    # head-major columns -> one contiguous (3*HD)-wide lane block per head;
    # stack along a new leading axis (heads as the batch dim of the einsums).
    qkv_h = jnp.stack([qkv[:, n * 3 * HD:(n + 1) * 3 * HD] for n in range(NH)],
                      axis=0)                                       # (NH, S, 3HD)
    q = qkv_h[:, :, 0 * HD:1 * HD].astype(jnp.bfloat16)             # (NH, S, HD)
    k = qkv_h[:, :, 1 * HD:2 * HD].astype(jnp.bfloat16)
    v = qkv_h[:, :, 2 * HD:3 * HD].astype(jnp.bfloat16)

    # ---- all heads at once: batched score einsum, single softmax, single PV -
    s = jnp.einsum('hqd,hkd->hqk', q, k,
                   preferred_element_type=jnp.float32)              # (NH, S, S) f32
    s = s + mask_ref[0]                        # (1,S) broadcasts over heads & query rows
    m = jnp.max(s, axis=-1, keepdims=True)
    p = jnp.exp(s - m)
    p = p / jnp.sum(p, axis=-1, keepdims=True)                      # exact normalization

    ctx = jnp.einsum('hqk,hkd->hqd', p.astype(jnp.bfloat16), v,
                     preferred_element_type=jnp.float32)            # (NH, S, HD)

    # merge heads (lane concat, head order matches wo's row order) -> ONE wo matmul
    ctx2d = jnp.concatenate([ctx[h] for h in range(NH)], axis=-1)   # (S, H)
    attn = jnp.dot(ctx2d.astype(jnp.bfloat16), wo_ref[...],
                   preferred_element_type=jnp.float32) + bo         # (S, H)

    # ---- residual; only the CLS row feeds the head in this 1-layer stand-in -
    h1 = x + attn
    cls = h1[0:1, :]                            # (1, H) CLS row (strided view, no concat)

    mu = jnp.mean(cls, axis=-1, keepdims=True)
    var = jnp.mean(jnp.square(cls - mu), axis=-1, keepdims=True)
    c1 = (cls - mu) * jax.lax.rsqrt(var + 1e-12) * g1 + be1         # (1, H)

    # ---- FFN + residual + LayerNorm on the single CLS row --------------------
    ff = jnp.dot(c1.astype(jnp.bfloat16), w1_ref[...],
                 preferred_element_type=jnp.float32) + b1
    ff = jax.nn.gelu(ff, approximate=True)     # TODO(synk): HF uses exact erf GELU
    ff = jnp.dot(ff.astype(jnp.bfloat16), w2_ref[...],
                 preferred_element_type=jnp.float32) + b2
    h2 = c1 + ff
    mu2 = jnp.mean(h2, axis=-1, keepdims=True)
    var2 = jnp.mean(jnp.square(h2 - mu2), axis=-1, keepdims=True)
    c2 = (h2 - mu2) * jax.lax.rsqrt(var2 + 1e-12) * g2 + be2        # (1, H)

    # ---- classifier head: VPU multiply + lane reduce (no 1-lane-wide MXU) ----
    logit = jnp.sum(c2 * wfc, axis=-1, keepdims=True) + bfc         # (1, 1)
    out_ref[...] = jax.nn.sigmoid(logit).reshape(1, 1, 1)


def make_params(key, vocab=128, seq=8, hidden=32, ffn=64):
    ks = jax.random.split(key, 16)
    n = lambda k, shape, s: (jax.random.normal(k, shape, jnp.float32) * s)
    H, F = hidden, ffn
    return dict(
        word_emb=n(ks[0], (vocab, H), 0.02),
        pos_emb=n(ks[1], (seq, H), 0.02),
        wq=n(ks[2], (H, H), 0.05), bq=jnp.zeros((1, H), jnp.float32),
        wk=n(ks[3], (H, H), 0.05), bk=jnp.zeros((1, H), jnp.float32),
        wv=n(ks[4], (H, H), 0.05), bv=jnp.zeros((1, H), jnp.float32),
        wo=n(ks[5], (H, H), 0.05), bo=jnp.zeros((1, H), jnp.float32),
        g1=jnp.ones((1, H), jnp.float32), be1=jnp.zeros((1, H), jnp.float32),
        w1=n(ks[6], (H, F), 0.05), b1=jnp.zeros((1, F), jnp.float32),
        w2=n(ks[7], (F, H), 0.05), b2=jnp.zeros((1, H), jnp.float32),
        g2=jnp.ones((1, H), jnp.float32), be2=jnp.zeros((1, H), jnp.float32),
        wfc=n(ks[8], (H, 1), 0.1), bfc=jnp.zeros((1, 1), jnp.float32),
    )


def text_classifier_forward(input_ids, attention_mask, params, num_heads=4):
    # Glue: embedding lookup (gather) and one-time weight fusion/packing stay in plain JAX.
    x = params['word_emb'][input_ids] + params['pos_emb'][None, :, :]   # (B, S, H) f32
    x = x.astype(jnp.float32)
    B, S, H = x.shape
    F = params['w1'].shape[1]
    hd = H // num_heads
    scale = 1.0 / math.sqrt(hd)

    # additive mask: 0.0 for valid tokens, -1e9 for padding (broadcast inside the kernel)
    mask_add = ((attention_mask.astype(jnp.float32) - 1.0) * 1e9).reshape(B, 1, S)

    # fused QKV weight/bias in HEAD-MAJOR column order ([q_h | k_h | v_h] per head),
    # softmax scale folded into the Q columns.
    wq, wk, wv = params['wq'] * scale, params['wk'], params['wv']
    bq, bk, bv = params['bq'] * scale, params['bk'], params['bv']
    wcols, bcols = [], []
    for h in range(num_heads):
        sl = slice(h * hd, (h + 1) * hd)
        wcols += [wq[:, sl], wk[:, sl], wv[:, sl]]
        bcols += [bq[:, sl], bk[:, sl], bv[:, sl]]
    wqkv = jnp.concatenate(wcols, axis=1).astype(jnp.bfloat16)          # (H, 3H)
    bqkv = jnp.concatenate(bcols, axis=1)                               # (1, 3H) f32

    wo = params['wo'].astype(jnp.bfloat16)
    w1 = params['w1'].astype(jnp.bfloat16)
    w2 = params['w2'].astype(jnp.bfloat16)

    # pack all small f32 vectors into one (10, 3H) slab: fewer inputs / DMA descriptors
    W3 = 3 * H
    pad = lambda v: jnp.pad(v, ((0, 0), (0, W3 - v.shape[1])))
    vecs = jnp.concatenate([
        bqkv,                      # row 0: (1, 3H)
        pad(params['b1']),         # row 1: FFN bias 1 (first F lanes)
        pad(params['bo']),         # row 2
        pad(params['g1']),         # row 3
        pad(params['be1']),        # row 4
        pad(params['b2']),         # row 5
        pad(params['g2']),         # row 6
        pad(params['be2']),        # row 7
        pad(params['wfc'].T),      # row 8: classifier weight row
        pad(params['bfc']),        # row 9: classifier bias at [9, 0]
    ], axis=0)                                                           # (10, 3H) f32

    kernel = functools.partial(encoder_classifier_kernel, num_heads=num_heads)

    out = pl.pallas_call(
        kernel,
        out_shape=jax.ShapeDtypeStruct((B, 1, 1), jnp.float32),
        grid_spec=pltpu.PrefetchScalarGridSpec(
            num_scalar_prefetch=0,
            grid=(B,),                                            # one sample per grid step
            in_specs=[
                pl.BlockSpec((1, S, H), lambda b: (b, 0, 0)),     # x (per-sample block)
                pl.BlockSpec((1, 1, S), lambda b: (b, 0, 0)),     # additive mask
                pl.BlockSpec((H, 3 * H), lambda b: (0, 0)),       # wqkv (resident across grid)
                pl.BlockSpec((H, H),     lambda b: (0, 0)),       # wo
                pl.BlockSpec((H, F),     lambda b: (0, 0)),       # w1
                pl.BlockSpec((F, H),     lambda b: (0, 0)),       # w2
                pl.BlockSpec((10, 3 * H), lambda b: (0, 0)),      # packed small vectors
            ],
            out_specs=pl.BlockSpec((1, 1, 1), lambda b: (b, 0, 0)),
        ),
        compiler_params=pltpu.CompilerParams(
            dimension_semantics=("parallel",)),                   # 2 TCs on v7x; free on v5e/v6e
    )(x, mask_add, wqkv, wo, w1, w2, vecs)
    return out.reshape(B, 1)


if __name__ == "__main__":
    key = jax.random.PRNGKey(0)
    k_params, k_ids = jax.random.split(key)

    B, S, H, VOCAB = 2, 8, 32, 128
    params = make_params(k_params, vocab=VOCAB, seq=S, hidden=H, ffn=2 * H)

    input_ids = jax.random.randint(k_ids, (B, S), 0, VOCAB, dtype=jnp.int32)
    # second example "shorter": last 3 tokens are padding
    attention_mask = jnp.array(
        [[1, 1, 1, 1, 1, 1, 1, 1],
         [1, 1, 1, 1, 1, 0, 0, 0]], dtype=jnp.int32)

    out = text_classifier_forward(input_ids, attention_mask, params)
    out = jax.block_until_ready(out)
    assert out.shape == (B, 1)
    assert bool(jnp.all((out >= 0.0) & (out <= 1.0)))
    print("KERNEL_OK")
</pallas_src>

<mosaic_0001>
module attributes {stable_mosaic.version = 11 : i64} {
  func.func @encoder_classifier_kernel(%arg0: i32, %arg1: memref<1x8x32xf32, #tpu.memory_space<vmem>>, %arg2: memref<1x1x8xf32, #tpu.memory_space<vmem>>, %arg3: memref<32x96xbf16, #tpu.memory_space<vmem>>, %arg4: memref<32x32xbf16, #tpu.memory_space<vmem>>, %arg5: memref<32x64xbf16, #tpu.memory_space<vmem>>, %arg6: memref<64x32xbf16, #tpu.memory_space<vmem>>, %arg7: memref<10x96xf32, #tpu.memory_space<vmem>>, %arg8: memref<1x1x1xf32, #tpu.memory_space<vmem>>) attributes {dimension_semantics = [#tpu.dimension_semantics<parallel>], iteration_bounds = array<i64: 2>, scalar_prefetch = 0 : i64, scratch_operands = 0 : i64, tpu.core_type = #tpu.core_type<tc>, window_params = [{transform_indices = @transform_0, window_bounds = array<i64: 1, 8, 32>}, {transform_indices = @transform_1, window_bounds = array<i64: 1, 1, 8>}, {pipeline_mode = #tpu.pipeline_mode<synchronous>, transform_indices = @transform_2, window_bounds = array<i64: 32, 96>}, {pipeline_mode = #tpu.pipeline_mode<synchronous>, transform_indices = @transform_3, window_bounds = array<i64: 32, 32>}, {pipeline_mode = #tpu.pipeline_mode<synchronous>, transform_indices = @transform_4, window_bounds = array<i64: 32, 64>}, {pipeline_mode = #tpu.pipeline_mode<synchronous>, transform_indices = @transform_5, window_bounds = array<i64: 64, 32>}, {pipeline_mode = #tpu.pipeline_mode<synchronous>, transform_indices = @transform_6, window_bounds = array<i64: 10, 96>}, {transform_indices = @transform_7, window_bounds = array<i64: 1, 1, 1>}]} {
    %c0 = arith.constant 0 : index
    %c0_0 = arith.constant 0 : index
    %c0_1 = arith.constant 0 : index
    %0 = vector.load %arg1[%c0, %c0_0, %c0_1] : memref<1x8x32xf32, #tpu.memory_space<vmem>>, vector<1x8x32xf32>
    %1 = vector.shape_cast %0 : vector<1x8x32xf32> to vector<8x32xf32>
    %c0_2 = arith.constant 0 : index
    %c0_3 = arith.constant 0 : index
    %2 = vector.load %arg7[%c0_2, %c0_3] : memref<10x96xf32, #tpu.memory_space<vmem>>, vector<10x96xf32>
    %3 = vector.extract_strided_slice %2 {offsets = [0, 0], sizes = [1, 96], strides = [1, 1]} : vector<10x96xf32> to vector<1x96xf32>
    %4 = vector.extract_strided_slice %2 {offsets = [1, 0], sizes = [1, 64], strides = [1, 1]} : vector<10x96xf32> to vector<1x64xf32>
    %5 = vector.extract_strided_slice %2 {offsets = [2, 0], sizes = [1, 32], strides = [1, 1]} : vector<10x96xf32> to vector<1x32xf32>
    %6 = vector.extract_strided_slice %2 {offsets = [3, 0], sizes = [1, 32], strides = [1, 1]} : vector<10x96xf32> to vector<1x32xf32>
    %7 = vector.extract_strided_slice %2 {offsets = [4, 0], sizes = [1, 32], strides = [1, 1]} : vector<10x96xf32> to vector<1x32xf32>
    %8 = vector.extract_strided_slice %2 {offsets = [5, 0], sizes = [1, 32], strides = [1, 1]} : vector<10x96xf32> to vector<1x32xf32>
    %9 = vector.extract_strided_slice %2 {offsets = [6, 0], sizes = [1, 32], strides = [1, 1]} : vector<10x96xf32> to vector<1x32xf32>
    %10 = vector.extract_strided_slice %2 {offsets = [7, 0], sizes = [1, 32], strides = [1, 1]} : vector<10x96xf32> to vector<1x32xf32>
    %11 = vector.extract_strided_slice %2 {offsets = [8, 0], sizes = [1, 32], strides = [1, 1]} : vector<10x96xf32> to vector<1x32xf32>
    %12 = vector.extract_strided_slice %2 {offsets = [9, 0], sizes = [1, 1], strides = [1, 1]} : vector<10x96xf32> to vector<1x1xf32>
    %13 = arith.truncf %1 : vector<8x32xf32> to vector<8x32xbf16>
    %c0_4 = arith.constant 0 : index
    %c0_5 = arith.constant 0 : index
    %14 = vector.load %arg3[%c0_4, %c0_5] : memref<32x96xbf16, #tpu.memory_space<vmem>>, vector<32x96xbf16>
    %cst = arith.constant dense<0.000000e+00> : vector<8x96xf32>
    %15 = tpu.matmul %13, %14, %cst {dimension_numbers = #tpu.dot_dimension_numbers<[1], [0], [0], [1], [0, 0, 1, 1], [], []>} : vector<8x32xbf16>, vector<32x96xbf16>, vector<8x96xf32> -> vector<8x96xf32>
    %16 = vector.broadcast %3 : vector<1x96xf32> to vector<8x96xf32>
    %17 = arith.addf %15, %16 : vector<8x96xf32>
    %18 = vector.extract_strided_slice %17 {offsets = [0, 0], sizes = [8, 24], strides = [1, 1]} : vector<8x96xf32> to vector<8x24xf32>
    %19 = vector.extract_strided_slice %17 {offsets = [0, 24], sizes = [8, 24], strides = [1, 1]} : vector<8x96xf32> to vector<8x24xf32>
    %20 = vector.extract_strided_slice %17 {offsets = [0, 48], sizes = [8, 24], strides = [1, 1]} : vector<8x96xf32> to vector<8x24xf32>
    %21 = vector.extract_strided_slice %17 {offsets = [0, 72], sizes = [8, 24], strides = [1, 1]} : vector<8x96xf32> to vector<8x24xf32>
    %22 = vector.shape_cast %18 : vector<8x24xf32> to vector<1x8x24xf32>
    %23 = vector.shape_cast %19 : vector<8x24xf32> to vector<1x8x24xf32>
    %24 = vector.shape_cast %20 : vector<8x24xf32> to vector<1x8x24xf32>
    %25 = vector.shape_cast %21 : vector<8x24xf32> to vector<1x8x24xf32>
    %26 = tpu.concatenate %22, %23, %24, %25 in 0 : vector<1x8x24xf32>, vector<1x8x24xf32>, vector<1x8x24xf32>, vector<1x8x24xf32> -> vector<4x8x24xf32>
    %27 = vector.extract_strided_slice %26 {offsets = [0, 0, 0], sizes = [4, 8, 8], strides = [1, 1, 1]} : vector<4x8x24xf32> to vector<4x8x8xf32>
    %28 = arith.truncf %27 : vector<4x8x8xf32> to vector<4x8x8xbf16>
    %29 = vector.extract_strided_slice %26 {offsets = [0, 0, 8], sizes = [4, 8, 8], strides = [1, 1, 1]} : vector<4x8x24xf32> to vector<4x8x8xf32>
    %30 = arith.truncf %29 : vector<4x8x8xf32> to vector<4x8x8xbf16>
    %31 = vector.extract_strided_slice %26 {offsets = [0, 0, 16], sizes = [4, 8, 8], strides = [1, 1, 1]} : vector<4x8x24xf32> to vector<4x8x8xf32>
    %32 = arith.truncf %31 : vector<4x8x8xf32> to vector<4x8x8xbf16>
    "tpu.trace_start"() <{level = 10 : i32, message = "hqd,hkd->hqk"}> : () -> ()
    %cst_6 = arith.constant dense<0.000000e+00> : vector<4x8x8xf32>
    %33 = tpu.matmul %28, %30, %cst_6 {dimension_numbers = #tpu.dot_dimension_numbers<[2], [2], [1], [1], [0, 0, 0, 1, 1, 1], [0], [0]>} : vector<4x8x8xbf16>, vector<4x8x8xbf16>, vector<4x8x8xf32> -> vector<4x8x8xf32>
    "tpu.trace_stop"() : () -> ()
    %c0_7 = arith.constant 0 : index
    %c0_8 = arith.constant 0 : index
    %c0_9 = arith.constant 0 : index
    %34 = vector.load %arg2[%c0_7, %c0_8, %c0_9] : memref<1x1x8xf32, #tpu.memory_space<vmem>>, vector<1x1x8xf32>
    %35 = vector.shape_cast %34 : vector<1x1x8xf32> to vector<1x8xf32>
    %36 = vector.shape_cast %35 : vector<1x8xf32> to vector<1x1x8xf32>
    %37 = vector.broadcast %36 : vector<1x1x8xf32> to vector<4x8x8xf32>
    %38 = arith.addf %33, %37 : vector<4x8x8xf32>
    %cst_10 = arith.constant dense<0xFF800000> : vector<4x8xf32>
    %39 = vector.multi_reduction <maximumf>, %38, %cst_10 [2] : vector<4x8x8xf32> to vector<4x8xf32>
    %40 = vector.shape_cast %39 : vector<4x8xf32> to vector<4x8x1xf32>
    %41 = vector.broadcast %40 : vector<4x8x1xf32> to vector<4x8x8xf32>
    %42 = arith.subf %38, %41 : vector<4x8x8xf32>
    %43 = math.exp %42 : vector<4x8x8xf32>
    %cst_11 = arith.constant dense<0.000000e+00> : vector<4x8xf32>
    %44 = vector.multi_reduction <add>, %43, %cst_11 [2] : vector<4x8x8xf32> to vector<4x8xf32>
    %45 = vector.shape_cast %44 : vector<4x8xf32> to vector<4x8x1xf32>
    %46 = vector.broadcast %45 : vector<4x8x1xf32> to vector<4x8x8xf32>
    %47 = arith.divf %43, %46 : vector<4x8x8xf32>
    %48 = arith.truncf %47 : vector<4x8x8xf32> to vector<4x8x8xbf16>
    "tpu.trace_start"() <{level = 10 : i32, message = "hqk,hkd->hqd"}> : () -> ()
    %cst_12 = arith.constant dense<0.000000e+00> : vector<4x8x8xf32>
    %49 = tpu.matmul %48, %32, %cst_12 {dimension_numbers = #tpu.dot_dimension_numbers<[2], [1], [1], [2], [0, 0, 0, 1, 1, 2], [0], [0]>} : vector<4x8x8xbf16>, vector<4x8x8xbf16>, vector<4x8x8xf32> -> vector<4x8x8xf32>
    "tpu.trace_stop"() : () -> ()
    %50 = vector.extract_strided_slice %49 {offsets = [0, 0, 0], sizes = [1, 8, 8], strides = [1, 1, 1]} : vector<4x8x8xf32> to vector<1x8x8xf32>
    %51 = vector.shape_cast %50 : vector<1x8x8xf32> to vector<8x8xf32>
    %52 = vector.extract_strided_slice %49 {offsets = [1, 0, 0], sizes = [1, 8, 8], strides = [1, 1, 1]} : vector<4x8x8xf32> to vector<1x8x8xf32>
    %53 = vector.shape_cast %52 : vector<1x8x8xf32> to vector<8x8xf32>
    %54 = vector.extract_strided_slice %49 {offsets = [2, 0, 0], sizes = [1, 8, 8], strides = [1, 1, 1]} : vector<4x8x8xf32> to vector<1x8x8xf32>
    %55 = vector.shape_cast %54 : vector<1x8x8xf32> to vector<8x8xf32>
    %56 = vector.extract_strided_slice %49 {offsets = [3, 0, 0], sizes = [1, 8, 8], strides = [1, 1, 1]} : vector<4x8x8xf32> to vector<1x8x8xf32>
    %57 = vector.shape_cast %56 : vector<1x8x8xf32> to vector<8x8xf32>
    %58 = tpu.concatenate %51, %53, %55, %57 in 1 : vector<8x8xf32>, vector<8x8xf32>, vector<8x8xf32>, vector<8x8xf32> -> vector<8x32xf32>
    %59 = arith.truncf %58 : vector<8x32xf32> to vector<8x32xbf16>
    %c0_13 = arith.constant 0 : index
    %c0_14 = arith.constant 0 : index
    %60 = vector.load %arg4[%c0_13, %c0_14] : memref<32x32xbf16, #tpu.memory_space<vmem>>, vector<32x32xbf16>
    %cst_15 = arith.constant dense<0.000000e+00> : vector<8x32xf32>
    %61 = tpu.matmul %59, %60, %cst_15 {dimension_numbers = #tpu.dot_dimension_numbers<[1], [0], [0], [1], [0, 0, 1, 1], [], []>} : vector<8x32xbf16>, vector<32x32xbf16>, vector<8x32xf32> -> vector<8x32xf32>
    %62 = vector.broadcast %5 : vector<1x32xf32> to vector<8x32xf32>
    %63 = arith.addf %61, %62 : vector<8x32xf32>
    %64 = arith.addf %1, %63 : vector<8x32xf32>
    %65 = vector.extract_strided_slice %64 {offsets = [0, 0], sizes = [1, 32], strides = [1, 1]} : vector<8x32xf32> to vector<1x32xf32>
    %cst_16 = arith.constant dense<0.000000e+00> : vector<1xf32>
    %66 = vector.multi_reduction <add>, %65, %cst_16 [1] : vector<1x32xf32> to vector<1xf32>
    %67 = vector.shape_cast %66 : vector<1xf32> to vector<1x1xf32>
    %cst_17 = arith.constant 3.200000e+01 : f32
    %68 = vector.broadcast %cst_17 : f32 to vector<1x1xf32>
    %69 = arith.divf %67, %68 : vector<1x1xf32>
    %70 = vector.broadcast %69 : vector<1x1xf32> to vector<1x32xf32>
    %71 = arith.subf %65, %70 : vector<1x32xf32>
    %72 = arith.mulf %71, %71 : vector<1x32xf32>
    %cst_18 = arith.constant dense<0.000000e+00> : vector<1xf32>
    %73 = vector.multi_reduction <add>, %72, %cst_18 [1] : vector<1x32xf32> to vector<1xf32>
    %74 = vector.shape_cast %73 : vector<1xf32> to vector<1x1xf32>
    %cst_19 = arith.constant 3.200000e+01 : f32
    %75 = vector.broadcast %cst_19 : f32 to vector<1x1xf32>
    %76 = arith.divf %74, %75 : vector<1x1xf32>
    %77 = vector.broadcast %69 : vector<1x1xf32> to vector<1x32xf32>
    %78 = arith.subf %65, %77 : vector<1x32xf32>
    %cst_20 = arith.constant 9.99999996E-13 : f32
    %79 = vector.broadcast %cst_20 : f32 to vector<1x1xf32>
    %80 = arith.addf %76, %79 : vector<1x1xf32>
    %81 = math.rsqrt %80 : vector<1x1xf32>
    %82 = vector.broadcast %81 : vector<1x1xf32> to vector<1x32xf32>
    %83 = arith.mulf %78, %82 : vector<1x32xf32>
    %84 = arith.mulf %83, %6 : vector<1x32xf32>
    %85 = arith.addf %84, %7 : vector<1x32xf32>
    %86 = arith.truncf %85 : vector<1x32xf32> to vector<1x32xbf16>
    %c0_21 = arith.constant 0 : index
    %c0_22 = arith.constant 0 : index
    %87 = vector.load %arg5[%c0_21, %c0_22] : memref<32x64xbf16, #tpu.memory_space<vmem>>, vector<32x64xbf16>
    %cst_23 = arith.constant dense<0.000000e+00> : vector<1x64xf32>
    %88 = tpu.matmul %86, %87, %cst_23 {dimension_numbers = #tpu.dot_dimension_numbers<[1], [0], [0], [1], [0, 0, 1, 1], [], []>} : vector<1x32xbf16>, vector<32x64xbf16>, vector<1x64xf32> -> vector<1x64xf32>
    %89 = arith.addf %88, %4 : vector<1x64xf32>
    %90 = arith.mulf %89, %89 : vector<1x64xf32>
    %91 = arith.mulf %89, %90 : vector<1x64xf32>
    %cst_24 = arith.constant 4.471500e-02 : f32
    %92 = vector.broadcast %cst_24 : f32 to vector<1x64xf32>
    %93 = arith.mulf %92, %91 : vector<1x64xf32>
    %94 = arith.addf %89, %93 : vector<1x64xf32>
    %cst_25 = arith.constant 0.797884583 : f32
    %95 = vector.broadcast %cst_25 : f32 to vector<1x64xf32>
    %96 = arith.mulf %95, %94 : vector<1x64xf32>
    %97 = math.tanh %96 : vector<1x64xf32>
    %cst_26 = arith.constant 1.000000e+00 : f32
    %98 = vector.broadcast %cst_26 : f32 to vector<1x64xf32>
    %99 = arith.addf %98, %97 : vector<1x64xf32>
    %cst_27 = arith.constant 5.000000e-01 : f32
    %100 = vector.broadcast %cst_27 : f32 to vector<1x64xf32>
    %101 = arith.mulf %100, %99 : vector<1x64xf32>
    %102 = arith.mulf %89, %101 : vector<1x64xf32>
    %103 = arith.truncf %102 : vector<1x64xf32> to vector<1x64xbf16>
    %c0_28 = arith.constant 0 : index
    %c0_29 = arith.constant 0 : index
    %104 = vector.load %arg6[%c0_28, %c0_29] : memref<64x32xbf16, #tpu.memory_space<vmem>>, vector<64x32xbf16>
    %cst_30 = arith.constant dense<0.000000e+00> : vector<1x32xf32>
    %105 = tpu.matmul %103, %104, %cst_30 {dimension_numbers = #tpu.dot_dimension_numbers<[1], [0], [0], [1], [0, 0, 1, 1], [], []>} : vector<1x64xbf16>, vector<64x32xbf16>, vector<1x32xf32> -> vector<1x32xf32>
    %106 = arith.addf %105, %8 : vector<1x32xf32>
    %107 = arith.addf %85, %106 : vector<1x32xf32>
    %cst_31 = arith.constant dense<0.000000e+00> : vector<1xf32>
    %108 = vector.multi_reduction <add>, %107, %cst_31 [1] : vector<1x32xf32> to vector<1xf32>
    %109 = vector.shape_cast %108 : vector<1xf32> to vector<1x1xf32>
    %cst_32 = arith.constant 3.200000e+01 : f32
    %110 = vector.broadcast %cst_32 : f32 to vector<1x1xf32>
    %111 = arith.divf %109, %110 : vector<1x1xf32>
    %112 = vector.broadcast %111 : vector<1x1xf32> to vector<1x32xf32>
    %113 = arith.subf %107, %112 : vector<1x32xf32>
    %114 = arith.mulf %113, %113 : vector<1x32xf32>
    %cst_33 = arith.constant dense<0.000000e+00> : vector<1xf32>
    %115 = vector.multi_reduction <add>, %114, %cst_33 [1] : vector<1x32xf32> to vector<1xf32>
    %116 = vector.shape_cast %115 : vector<1xf32> to vector<1x1xf32>
    %cst_34 = arith.constant 3.200000e+01 : f32
    %117 = vector.broadcast %cst_34 : f32 to vector<1x1xf32>
    %118 = arith.divf %116, %117 : vector<1x1xf32>
    %119 = vector.broadcast %111 : vector<1x1xf32> to vector<1x32xf32>
    %120 = arith.subf %107, %119 : vector<1x32xf32>
    %cst_35 = arith.constant 9.99999996E-13 : f32
    %121 = vector.broadcast %cst_35 : f32 to vector<1x1xf32>
    %122 = arith.addf %118, %121 : vector<1x1xf32>
    %123 = math.rsqrt %122 : vector<1x1xf32>
    %124 = vector.broadcast %123 : vector<1x1xf32> to vector<1x32xf32>
    %125 = arith.mulf %120, %124 : vector<1x32xf32>
    %126 = arith.mulf %125, %9 : vector<1x32xf32>
    %127 = arith.addf %126, %10 : vector<1x32xf32>
    %128 = arith.mulf %127, %11 : vector<1x32xf32>
    %cst_36 = arith.constant dense<0.000000e+00> : vector<1xf32>
    %129 = vector.multi_reduction <add>, %128, %cst_36 [1] : vector<1x32xf32> to vector<1xf32>
    %130 = vector.shape_cast %129 : vector<1xf32> to vector<1x1xf32>
    %131 = arith.addf %130, %12 : vector<1x1xf32>
    %132 = arith.negf %131 : vector<1x1xf32>
    %133 = math.exp %132 : vector<1x1xf32>
    %cst_37 = arith.constant 1.000000e+00 : f32
    %134 = vector.broadcast %cst_37 : f32 to vector<1x1xf32>
    %135 = arith.addf %134, %133 : vector<1x1xf32>
    %136 = arith.divf %134, %135 : vector<1x1xf32>
    %137 = vector.shape_cast %136 : vector<1x1xf32> to vector<1x1x1xf32>
    %c0_38 = arith.constant 0 : index
    %c0_39 = arith.constant 0 : index
    %c0_40 = arith.constant 0 : index
    %138 = vector.load %arg8[%c0_38, %c0_39, %c0_40] : memref<1x1x1xf32, #tpu.memory_space<vmem>>, vector<1x1x1xf32>
    tpu.vector_store %arg8[%c0_38, %c0_39, %c0_40], %137 {strides = array<i32>} : memref<1x1x1xf32, #tpu.memory_space<vmem>>, vector<1x1x1xf32>,
    return
  }
  func.func @transform_0(%arg0: i32) -> (i32, i32, i32) {
    %c0_i32 = arith.constant 0 : i32
    %c0_i32_0 = arith.constant 0 : i32
    %c0_i32_1 = arith.constant 0 : i32
    return %arg0, %c0_i32, %c0_i32_0 : i32, i32, i32
  }
  func.func @transform_1(%arg0: i32) -> (i32, i32, i32) {
    %c0_i32 = arith.constant 0 : i32
    %c0_i32_0 = arith.constant 0 : i32
    %c0_i32_1 = arith.constant 0 : i32
    return %arg0, %c0_i32, %c0_i32_0 : i32, i32, i32
  }
  func.func @transform_2(%arg0: i32) -> (i32, i32) {
    %c0_i32 = arith.constant 0 : i32
    %c0_i32_0 = arith.constant 0 : i32
    %c0_i32_1 = arith.constant 0 : i32
    return %c0_i32, %c0_i32_0 : i32, i32
  }
  func.func @transform_3(%arg0: i32) -> (i32, i32) {
    %c0_i32 = arith.constant 0 : i32
    %c0_i32_0 = arith.constant 0 : i32
    %c0_i32_1 = arith.constant 0 : i32
    return %c0_i32, %c0_i32_0 : i32, i32
  }
  func.func @transform_4(%arg0: i32) -> (i32, i32) {
    %c0_i32 = arith.constant 0 : i32
    %c0_i32_0 = arith.constant 0 : i32
    %c0_i32_1 = arith.constant 0 : i32
    return %c0_i32, %c0_i32_0 : i32, i32
  }
  func.func @transform_5(%arg0: i32) -> (i32, i32) {
    %c0_i32 = arith.constant 0 : i32
    %c0_i32_0 = arith.constant 0 : i32
    %c0_i32_1 = arith.constant 0 : i32
    return %c0_i32, %c0_i32_0 : i32, i32
  }
  func.func @transform_6(%arg0: i32) -> (i32, i32) {
    %c0_i32 = arith.constant 0 : i32
    %c0_i32_0 = arith.constant 0 : i32
    %c0_i32_1 = arith.constant 0 : i32
    return %c0_i32, %c0_i32_0 : i32, i32
  }
  func.func @transform_7(%arg0: i32) -> (i32, i32, i32) {
    %c0_i32 = arith.constant 0 : i32
    %c0_i32_0 = arith.constant 0 : i32
    %c0_i32_1 = arith.constant 0 : i32
    return %arg0, %c0_i32, %c0_i32_0 : i32, i32, i32
  }
}

</mosaic_0001>

<bundles_post_ra>
// kernel: tpu_custom_call.1
= control target key start
LH: loop header
LB: loop body
LE: loop exit
PB: predicated region body
PF: predicated region fallthrough
CT: control target
= control target key end

     0   :  { %12 = vsyncpa [#allocation3], 0  ;;  %s1590_s0 = inlined_call_operand.vmem [shape: f32[2,8,32], index: 0, kind: input, shape index: {}]   ;;  %s1591_s1 = inlined_call_operand.hbm [shape: f32[2,1,8], index: 1, kind: input, shape index: {}]   ;;  %s1592_s2 = inlined_call_operand.vmem [shape: bf16[32,96], index: 2, kind: input, shape index: {}]   ;;  %s1593_s3 = inlined_call_operand.vmem [shape: bf16[32,32], index: 3, kind: input, shape index: {}]   ;;  %s1594_s4 = inlined_call_operand.hbm [shape: bf16[32,64], index: 4, kind: input, shape index: {}]   ;;  %s1595_s5 = inlined_call_operand.vmem [shape: bf16[64,32], index: 5, kind: input, shape index: {}]   ;;  %s1596_s6 = inlined_call_operand.hbm [shape: f32[10,96], index: 6, kind: input, shape index: {}]   ;;  %s1597_s7 = inlined_call_operand.vmem [shape: f32[2,1,1], index: 7, kind: output, shape index: {}]  }
   0x1   :  { %14 = vsyncpa [#allocation3 + $0x1], 0 }
   0x2   :  { %15 = vsyncpa [#allocation5], 0  ;;  %s1369_s24 = smov 0   ;;  %s1371_s25 = smov 0  }
   0x3   :  { %s1373_s26 = smov 0   ;;  %s1375_s27 = smov 0  }
   0x4 LB: > { %s226_s30 = sshll.u32 %s1594_s4, 4  ;;  %s1393_s8 = sadd.s32 4294967295, %s1312_s27   ;;  %s1312_s27 = sphi %s1375_s27, %s1604_s27   ;;  %s1308_s26 = sphi %s1373_s26, %s1603_s26   ;;  %s1304_s25 = sphi %s1371_s25, %s1602_s25   ;;  %s1300_s24 = sphi %s1369_s24, %s1601_s24   ;;  %s227_s30 = int_to_ptr.hbm [resolvable:$true] %s226_s30 }
   0x5   : > { %p1009_p0 = scmp.ge.s32.totalorder %s1312_s27, 1  ;;  %p68_p1 = scmp.eq.s32.totalorder %s1393_s8, 0 }
   0x6   : > { %p209_p2 = scmp.lt.s32.totalorder %s1312_s27, 3  ;;  %s1314_s10 = smov [#allocation4]  }
   0x7   : > { %s228_s11 = sshll.u32 %s1314_s10, 4  ;;  %s243_s14 = sshll.u32 %s1596_s6, 4  ;;  %s229_s11 = int_to_ptr.vmem [resolvable:$true] %s228_s11  ;;  %s244_s14 = int_to_ptr.hbm [resolvable:$true] %s243_s14 }
   0x8   : > { %p1398_p3 = pnand %p1009_p0, %p209_p2  ;;  %s1315_s15 = smov [#allocation6]  }
   0x9   : > { %s245_s16 = sshll.u32 %s1315_s15, 4  ;;  %s1316_s17 = smov 64   ;;  %s246_s16 = int_to_ptr.vmem [resolvable:$true] %s245_s16 }
   0xa   : > { %p1092_p4 = pneg %p1398_p3  ;;  %s1317_s18 = smov 4  }
   0xb   : > { %s1318_s19 = smov 128   ;;  %s1319_s20 = smov 8  }
   0xc   : > { %p1093_p5 = pnand %p1092_p4, %p68_p1  ;;  %s1410_s21 = sadd.s32 1, %s1312_s27  }
   0xd   : > { %s54_s22 = sadd.s32 1, %s1308_s26  ;;  %s51_s23 = ssub.s32 %s1312_s27, %s1410_s21 }
   0xe   : > { %1095 = dma.hbm_to_vmem [thread:$0]  (!%p1093_p5), %s227_s30, 256, %s229_s11, [#allocation5], %s1316_s17, %s1316_s17, %s1317_s18  }
   0xf   : > { %1098 = dma.hbm_to_vmem [thread:$0]  (!%p1093_p5), %s244_s14, 256, %s246_s16, [#allocation5], %s1318_s19, %s1318_s19, %s1319_s20  }
  0x10   : > { %p61_p6 = scmp.ne.s32.totalorder %s1308_s26, %s1304_s25  ;;  %p52_p7 = scmp.eq.s32.totalorder %s51_s23, 0 }
  0x11   : > { %p62_p8 = scmp.eq.s32.totalorder %s1312_s27, 0  ;;  %p67_p9 = scmp.ne.s32.totalorder %s1304_s25, %s1300_s24 }
  0x12   : > { %p1105_p10 = scmp.lt.s32.totalorder %s1312_s27, 2  ;;  %s266_s30 = sand.u32 1, %s1308_s26  }
  0x13   : > { %s1422_s28 = scalar_select %p52_p7, %s1308_s26, %s54_s22  }
  0x14   : > { %p63_p11 = por %p62_p8, %p61_p6  ;;  %p1426_p12 = por %p68_p1, %p67_p9 }
  0x15   : > { %s272_s12 = scalar_lea.hbm %s1591_s1, %s1312_s27  ;;  %s269_s14 = scalar_lea.vmem [#allocation2], %s266_s30 }
  0x16   : > { %s274_s13 = sshll.u32 %s272_s12, 4  ;;  %s276_s15 = sshll.u32 %s269_s14, 4  ;;  %s275_s13 = int_to_ptr.hbm [resolvable:$true] %s274_s13  ;;  %s277_s15 = int_to_ptr.vmem [resolvable:$true] %s276_s15 }
  0x17   : > { %p1435_p13 = pnand %p1105_p10, %p63_p11  ;;  %s267_s16 = scalar_lea.sflag [#allocation3], %s266_s30 }
  0x18   : > { %s1244_s17 = sshra.s32 %s275_s13, 4  ;;  %s1251_s20 = scalar_lea.hbm %s1591_s1, 2  ;;  %s1245_s17 = int_to_ptr.hbm [resolvable:$true] %s1244_s17 }
  0x19   : > { %s1246_s18 = scalar_lea.hbm %s1245_s17, 1  ;;  %p1248_p2 = pneg %p1435_p13 }
  0x1a   : > { %p1247_p0 = scmp.ne.s32.totalorder %s1245_s17, %s1246_s18  ;;  %p1252_p6 = scmp.lt.s32.totalorder %s1245_s17, %s1591_s1 }
  0x1b   : > { %p1253_p7 = scmp.lt.s32.totalorder %s1251_s20, %s1246_s18 }
  0x1c   : > { %p1249_p4 = pnand %p1248_p2, %p1247_p0 }
  0x1d   : > { %p1254_p8 = por %p1253_p7, %p1252_p6 }
  0x1e   : > { %p1250_p5 = pneg %p1249_p4 }
  0x20   : > { %p1255_p9 = pnand %p1254_p8, %p1250_p5 }
  0x22   : > { %1258 = shalt.err (!%p1255_p9)
}
  0x23   : > { %1102 = dma.hbm_to_vmem [thread:$0]  (!%p1435_p13), %s275_s13, 16, %s277_s15, %s267_s16  }
  0x24   : > { %285 = sbr.rel (%p1398_p3) target bundleno = 2178 (0x882), region = 48  ;;  %s287_s30 = sand.u32 (!%p1398_p3), 1, %s1304_s25  }
  0x25   : > { %s288_s10 = scalar_lea.sflag (!%p1398_p3), [#allocation3], %s287_s30  ;;  %s1452_s11 = scalar_lea.vmem (!%p1398_p3), [#allocation2], %s287_s30 }
  0x29   : > { %1291 = dma.done.wait (%p1426_p12), %s288_s10, 16  }
  0x2a   : > { %1293 = vsyncadd (%p1426_p12), %s288_s10, 4294967280 }
  0x2b   : > { %1295 = dma.done.wait (%p68_p1), [#allocation5], 512  }
  0x2c   : > { %1297 = vsyncadd (%p68_p1), [#allocation5], 4294966784  ;;  %p333_p3 = scmp.lt.s32.totalorder %s1393_s8, 1  ;;  %v1073_v0 = vld [vmem:[%s1592_s2 + $0x8] sm:$0xff]  ;;  %v1072_v1 = vld [vmem:[%s1592_s2] sm:$0xff]  ;;  %vm362_vm0 = vcmask 261120  }
  0x2d   : > { %372 = vmatpush.bf16.msra.mxu0 %v1073_v0  ;;  %v1481_v4 = vld [vmem:[#allocation6] sm:$0xff]  ;;  %s1320_s17 = smov 56   ;;  %s1321_s18 = smov 104   ;;  %vm402_vm1 = vcmask 64512   ;;  %v1155_v34 = vld [vmem:[%s1452_s11] ss:$0 sm:$0xff] }
  0x2e   : > { %s1606_s8 = smov (!%p333_p3, %s1393_s8), 1  ;;  %v349_v5 = vperm.slane %v1481_v4, 0  ;;  %s1322_s27 = smov 80   ;;  %vm599_vm2 = vcmask 1043456  }
  0x2f   : > { %s1016_s9 = sshll.u32 %s1606_s8, 3  ;;  %s1323_s19 = smov 120  }
  0x30   : > { %s336_s14 = scalar_lea.vmem %s1590_s0, %s1016_s9  ;;  %s1324_s20 = smov 112  }
  0x31   : > { %v1476_v2 = vld [vmem:[%s336_s14] sm:$0xff]  ;;  %373 = vmatpush.bf16.msra.mxu0 %v1072_v1  ;;  %s1325_s22 = smov 16   ;;  %s1326_s23 = smov 8  }
  0x32   : > { %v344_v3 = vpack.c.bf16 %v1476_v2, %v1476_v2  ;;  %s1327_s30 = smov 24  }
  0x34   : > { %1025 = vmatmul.msk.bf16.vlgmr.msra.gmra.mxu0 %vm362_vm0, %v344_v3 }
  0xb1   : > { %v375_v6 = vpop.f32.mrf.mxu0 }
  0xb2   : > { %v376_v7 = vadd.f32 %v375_v6, %v349_v5 }
  0xb4   : > { %386 = vrot.lane.b32.xlu1 %v376_v7, %s1320_s17  ;;  %380 = vrot.lane.b32.xlu0 %v376_v7, %s1321_s18  ;;  %v389_v9 = vpack.c.bf16 %v376_v7, %v376_v7 }
  0xb6   : > { %v398_v10 = vunpack.c.l.b16 %v389_v9 }
  0xb8   : > { %v1484_v11 = vpack.c.b16 %v398_v10, %v398_v10 }
  0xb9   : > { %v377_v8 = vpop.f32.mrf.mxu0 }
  0xbc   : > { %383 = vrot.lane.b32.xlu0 %v376_v7, %s1322_s27 }
  0xc4   : > { %400 = vrot.lane.b32.xlu0 %v1484_v11, %s1323_s19 }
 0x126   : > { %v381_v12 = vpop.permute.xlu0 %380  ;;  %v387_v18 = vpop.permute.xlu1 %386 }
 0x127   : > { %v390_v13 = vpack.c.bf16 %v381_v12, %v381_v12  ;;  %v392_v20 = vpack.c.bf16 %v387_v18, %v387_v18 }
 0x129   : > { %v423_v14 = vunpack.c.l.b16 %v390_v13  ;;  %v471_v23 = vunpack.c.l.b16 %v392_v20 }
 0x12b   : > { %v1487_v15 = vpack.c.b16 %v423_v14, %v423_v14  ;;  %v472_v25 = vpack.c.b16 %v471_v23, %v471_v23 }
 0x12d   : > { %425 = vrot.lane.b32.xlu1 %v1487_v15, %s1323_s19 }
 0x12e   : > { %v384_v16 = vpop.permute.xlu0 %383 }
 0x12f   : > { %v391_v17 = vpack.c.bf16 %v384_v16, %v384_v16 }
 0x131   : > { %v447_v19 = vunpack.c.l.b16 %v391_v17 }
 0x133   : > { %v1490_v21 = vpack.c.b16 %v447_v19, %v447_v19 }
 0x135   : > { %449 = vrot.lane.b32.xlu2 %v1490_v21, %s1323_s19 }
 0x136   : > { %v401_v22 = vpop.permute.xlu0 %400 }
 0x137   : > { %v407_v24 = vsel %vm402_vm1, %v401_v22, 0 }
 0x138   : > { %416 = vmatpush.bf16.xpose.msra.mxu1 %v407_v24 }
 0x13d   : > { %473 = vrot.lane.b32.xlu2 %v472_v25, %s1323_s19 }
 0x13f   : > { %1026 = vmatmul.msk.bf16.vlgmr.msra.gmra.mxu1 %vm402_vm1, %v389_v9 }
 0x18f   : > { %v450_v26 = vpop.permute.xlu2 %449 }
 0x190   : > { %v455_v27 = vsel %vm402_vm1, %v450_v26, 0 }
 0x191   : > { %464 = vmatpush.bf16.xpose.msra.mxu3 %v455_v27 }
 0x197   : > { %v474_v28 = vpop.permute.xlu2 %473 }
 0x198   : > { %1028 = vmatmul.msk.bf16.vlgmr.msra.gmra.mxu3 %vm402_vm1, %v391_v17  ;;  %v479_v29 = vsel %vm402_vm1, %v474_v28, 0 }
 0x199   : > { %488 = vmatpush.bf16.xpose.msrb.mxu0 %v479_v29 }
 0x19f   : > { %v426_v30 = vpop.permute.xlu1 %425 }
 0x1a0   : > { %1029 = vmatmul.msk.bf16.vlgmr.msrb.gmra.mxu0 %vm402_vm1, %v392_v20  ;;  %v431_v31 = vsel %vm402_vm1, %v426_v30, 0 }
 0x1a1   : > { %440 = vmatpush.bf16.xpose.msra.mxu2 %v431_v31 }
 0x1a8   : > { %1027 = vmatmul.msk.bf16.vlgmr.msra.gmra.mxu2 %vm402_vm1, %v390_v13 }
 0x1bc   : > { %v418_v32 = vpop.f32.mrf.mxu1 }
 0x1bd   : > { %v419_v41 = vadd.f32 %v1155_v34, %v418_v32 }
 0x1bf   : > { %v494_v44 = vsel %vm402_vm1, %v419_v41, -inf }
 0x1c4   : > { %v420_v33 = vpop.f32.mrf.mxu1 }
 0x21b   : > { %v466_v35 = vpop.f32.mrf.mxu3 }
 0x21c   : > { %v467_v36 = vadd.f32 %v1155_v34, %v466_v35 }
 0x21d   : > { %v490_v37 = vpop.f32.mrf.mxu0 }
 0x21e   : > { %v491_v38 = vadd.f32 %v1155_v34, %v490_v37  ;;  %v500_v39 = vsel %vm402_vm1, %v467_v36, -inf }
 0x21f   : > { %501 = vmax.xlane.f32.xlu2 %v500_v39 }
 0x220   : > { %v503_v40 = vsel %vm402_vm1, %v491_v38, -inf }
 0x221   : > { %504 = vmax.xlane.f32.xlu0 %v503_v40 }
 0x223   : > { %v468_v42 = vpop.f32.mrf.mxu3 }
 0x225   : > { %v492_v43 = vpop.f32.mrf.mxu0 }
 0x227   : > { %495 = vmax.xlane.f32.xlu2 %v494_v44 }
 0x22b   : > { %v442_v45 = vpop.f32.mrf.mxu2 }
 0x22c   : > { %v443_v46 = vadd.f32 %v1155_v34, %v442_v45 }
 0x22e   : > { %v497_v47 = vsel %vm402_vm1, %v443_v46, -inf }
 0x22f   : > { %498 = vmax.xlane.f32.xlu1 %v497_v47 }
 0x233   : > { %v444_v48 = vpop.f32.mrf.mxu2 }
 0x292   : > { %v502_v49 = vpop.xlane.xlu2 %501 }
 0x293   : > { %v508_v50 = vsub.f32 %v467_v36, %v502_v49 }
 0x294   : > { %v505_v51 = vpop.xlane.xlu0 %504 }
 0x295   : > { %v514_v52 = vmul.f32 1.442695, %v508_v50  ;;  %v509_v53 = vsub.f32 %v491_v38, %v505_v51 }
 0x297   : > { %1156 = vpow2.f32 %v514_v52  ;;  %v516_v54 = vmul.f32 1.442695, %v509_v53 }
 0x299   : > { %1158 = vpow2.f32 %v516_v54 }
 0x29a   : > { %v496_v0 = vpop.xlane.xlu2 %495 }
 0x29b   : > { %v506_v1 = vsub.f32 %v419_v41, %v496_v0 }
 0x29d   : > { %v1506_v55 = vpop.eup %1156  ;;  %v510_v3 = vmul.f32 1.442695, %v506_v1 }
 0x29e   : > { %v524_v56 = vsel %vm402_vm1, %v1506_v55, 0.0 }
 0x29f   : > { %v1159_v57 = vpop.eup %1158  ;;  %525 = vadd.xlane.f32.xlu2 %v524_v56 }
 0x2a0   : > { %v527_v58 = vsel %vm402_vm1, %v1159_v57, 0.0 }
 0x2a1   : > { %528 = vadd.xlane.f32.xlu0 %v527_v58 }
 0x2a2   : > { %v499_v59 = vpop.xlane.xlu1 %498 }
 0x2a3   : > { %v507_v60 = vsub.f32 %v443_v46, %v499_v59 }
 0x2a5   : > { %v512_v61 = vmul.f32 1.442695, %v507_v60 }
 0x2a7   : > { %1160 = vpow2.f32 %v512_v61 }
 0x2a8   : > { %1162 = vpow2.f32 %v510_v3 }
 0x2ad   : > { %v1511_v62 = vpop.eup %1160 }
 0x2ae   : > { %v521_v63 = vsel %vm402_vm1, %v1511_v62, 0.0  ;;  %v1518_v5 = vpop.eup %1162 }
 0x2af   : > { %522 = vadd.xlane.f32.xlu1 %v521_v63  ;;  %v518_v6 = vsel %vm402_vm1, %v1518_v5, 0.0 }
 0x2b5   : > { %658 = vrot.lane.b32.xlu0 %v472_v25, %s1324_s20 }
 0x2b7   : > { %637 = vrot.lane.b32.xlu2 %v1490_v21, %s1324_s20 }
 0x2bd   : > { %594 = vrot.lane.b32.xlu0 %v1484_v11, %s1324_s20 }
 0x2c8   : > { %616 = vrot.lane.b32.xlu1 %v1487_v15, %s1324_s20  ;;  %s339_s20 = scalar_lea.vmem %s1597_s7, %s1606_s8 }
 0x2f2   : > { %519 = vadd.xlane.f32.xlu1 %v518_v6 }
 0x312   : > { %v526_v7 = vpop.xlane.xlu2 %525 }
 0x313   : > { %1164 = vrcp.f32 %v526_v7  ;;  %v571_v17 = vand.u32 2147483648, %v526_v7  ;;  %vm565_vm4 = vweird.f32 %v526_v7  ;;  %v569_v19 = vand.u32 2147483647, %v526_v7 }
 0x314   : > { %v529_v8 = vpop.xlane.xlu0 %528 }
 0x315   : > { %1166 = vrcp.f32 %v529_v8  ;;  %v586_v20 = vand.u32 2147483648, %v529_v8  ;;  %v584_v23 = vand.u32 2147483647, %v529_v8  ;;  %v572_v24 = vor.u32 1.1754944e-38, %v571_v17 }
 0x316   : > { %vm580_vm7 = vweird.f32 %v529_v8  ;;  %vm570_vm8 = vcmp.eq.f32.partialorder %v569_v19, 8.507059e+37 }
 0x317   : > { %v587_v28 = vor.u32 1.1754944e-38, %v586_v20  ;;  %vm585_vm10 = vcmp.eq.f32.partialorder %v584_v23, 8.507059e+37 }
 0x319   : > { %v1165_v9 = vpop.eup %1164 }
 0x31a   : > { %v561_v10 = vmul.f32 %v1165_v9, %v526_v7  ;;  %v638_v11 = vpop.permute.xlu2 %637  ;;  %vm566_vm3 = vweird.f32 %v1165_v9 }
 0x31b   : > { %v1167_v12 = vpop.eup %1166  ;;  %v643_v13 = vsel %vm599_vm2, %v638_v11, 0  ;;  %vm567_vm6 = vmor %vm565_vm4, %vm566_vm3 }
 0x31c   : > { %v562_v14 = vsub.f32 1.0, %v561_v10  ;;  %v576_v15 = vmul.f32 %v1167_v12, %v529_v8  ;;  %652 = vmatpush.bf16.msrb.mxu3 %v643_v13  ;;  %vm581_vm5 = vweird.f32 %v1167_v12 }
 0x31d   : > { %vm582_vm9 = vmor %vm580_vm7, %vm581_vm5  ;;  %vm731_vm7 = vcmask 253952  }
 0x31e   : > { %v563_v16 = vmul.f32 %v1165_v9, %v562_v14  ;;  %v577_v18 = vsub.f32 1.0, %v576_v15  ;;  %v1074_v14 = vld [vmem:[%s1593_s3] sm:$0xff] }
 0x320   : > { %v564_v21 = vadd.f32 %v1165_v9, %v563_v16  ;;  %v578_v22 = vmul.f32 %v1167_v12, %v577_v18 }
 0x322   : > { %v579_v25 = vadd.f32 %v1167_v12, %v578_v22  ;;  %v523_v26 = vpop.xlane.xlu1 %522  ;;  %v568_v27 = vsel %vm567_vm6, %v1165_v9, %v564_v21  ;;  %vm694_vm6 = vcmask 195584   ;;  %v701_v22 = vperm.slane %v1481_v4, 2 }
 0x323   : > { %1168 = vrcp.f32 %v523_v26  ;;  %v573_v30 = vsel %vm570_vm8, %v572_v24, %v568_v27  ;;  %v556_v44 = vand.u32 2147483648, %v523_v26  ;;  %vm550_vm12 = vweird.f32 %v523_v26 }
 0x324   : > { %v583_v29 = vsel %vm582_vm9, %v1167_v12, %v579_v25  ;;  %v574_v32 = vmul.f32 %v1506_v55, %v573_v30  ;;  %v554_v46 = vand.u32 2147483647, %v523_v26 }
 0x325   : > { %v588_v31 = vsel %vm585_vm10, %v587_v28, %v583_v29  ;;  %v557_v48 = vor.u32 1.1754944e-38, %v556_v44  ;;  %v1328_v28 = vmov 32.0  }
 0x326   : > { %v589_v33 = vmul.f32 %v1159_v57, %v588_v31  ;;  %v592_v35 = vpack.c.bf16 %v574_v32, %v574_v32  ;;  %vm555_vm14 = vcmp.eq.f32.partialorder %v554_v46, 8.507059e+37 }
 0x327   : > { %v659_v34 = vpop.permute.xlu0 %658 }
 0x328   : > { %v664_v36 = vsel %vm599_vm2, %v659_v34, 0  ;;  %1032 = vmatmul.msk.bf16.vlgmr.msrb.gmra.mxu3 %vm402_vm1, %v592_v35  ;;  %v593_v39 = vpack.c.bf16 %v589_v33, %v589_v33 }
 0x329   : > { %v1169_v37 = vpop.eup %1168  ;;  %673 = vmatpush.bf16.msra.mxu0 %v664_v36 }
 0x32a   : > { %v546_v38 = vmul.f32 %v1169_v37, %v523_v26  ;;  %vm551_vm11 = vweird.f32 %v1169_v37 }
 0x32b   : > { %vm552_vm13 = vmor %vm550_vm12, %vm551_vm11 }
 0x32c   : > { %v547_v40 = vsub.f32 1.0, %v546_v38  ;;  %1033 = vmatmul.msk.bf16.vlgmr.msra.gmra.mxu0 %vm402_vm1, %v593_v39  ;;  %v1077_v39 = vld [vmem:[#allocation4 + $0x8] sm:$0xff] }
 0x32e   : > { %v548_v41 = vmul.f32 %v1169_v37, %v547_v40  ;;  %v1076_v40 = vld [vmem:[#allocation4] sm:$0xff] }
 0x32f   : > { %v595_v42 = vpop.permute.xlu0 %594 }
 0x330   : > { %v549_v43 = vadd.f32 %v1169_v37, %v548_v41  ;;  %v601_v45 = vsel %vm599_vm2, %v595_v42, 0 }
 0x331   : > { %610 = vmatpush.bf16.msrb.mxu1 %v601_v45 }
 0x332   : > { %v553_v47 = vsel %vm552_vm13, %v1169_v37, %v549_v43 }
 0x333   : > { %v558_v49 = vsel %vm555_vm14, %v557_v48, %v553_v47 }
 0x334   : > { %v559_v50 = vmul.f32 %v1511_v62, %v558_v49 }
 0x336   : > { %v591_v53 = vpack.c.bf16 %v559_v50, %v559_v50  ;;  %v762_v50 = vrot.slane %v1481_v4, 3 }
 0x33a   : > { %v617_v51 = vpop.permute.xlu1 %616 }
 0x33b   : > { %v622_v52 = vsel %vm599_vm2, %v617_v51, 0  ;;  %vm692_vm2 = vcmask 130048  }
 0x33c   : > { %631 = vmatpush.bf16.msrb.mxu2 %v622_v52  ;;  %v765_v52 = vrot.slane %v1481_v4, 4 }
 0x33f   : > { %1031 = vmatmul.msk.bf16.vlgmr.msrb.gmra.mxu2 %vm402_vm1, %v591_v53 }
 0x340   : > { %796 = vmatpush.bf16.msra.mxu2 %v1077_v39 }
 0x344   : > { %797 = vmatpush.bf16.msra.mxu2 %v1076_v40 }
 0x365   : > { %v520_v54 = vpop.xlane.xlu1 %519 }
 0x366   : > { %1170 = vrcp.f32 %v520_v54  ;;  %v541_v58 = vand.u32 2147483648, %v520_v54  ;;  %v539_v60 = vand.u32 2147483647, %v520_v54  ;;  %vm535_vm3 = vweird.f32 %v520_v54 }
 0x367   : > { %1172 = vrcp.f32 %v1328_v28 }
 0x368   : > { %v542_v62 = vor.u32 1.1754944e-38, %v541_v58  ;;  %vm540_vm5 = vcmp.eq.f32.partialorder %v539_v60, 8.507059e+37  ;;  %v1080_v58 = vld [vmem:[%s1595_s5 + $0x10] sm:$0xff]  ;;  %v1078_v60 = vld [vmem:[%s1595_s5] sm:$0xff] }
 0x36c   : > { %v1171_v55 = vpop.eup %1170 }
 0x36d   : > { %v531_v56 = vmul.f32 %v1171_v55, %v520_v54  ;;  %vm536_vm15 = vweird.f32 %v1171_v55  ;;  %v1173_v29 = vpop.eup %1172 }
 0x36e   : > { %vm537_vm4 = vmor %vm535_vm3, %vm536_vm15  ;;  %v736_v30 = vmul.f32 32.0, %v1173_v29  ;;  %vm920_vm3 = vcmask 0  }
 0x36f   : > { %v532_v57 = vsub.f32 1.0, %v531_v56 }
 0x370   : > { %v737_v31 = vsub.f32 1.0, %v736_v30 }
 0x371   : > { %v533_v59 = vmul.f32 %v1171_v55, %v532_v57  ;;  %v1081_v57 = vld [vmem:[%s1595_s5 + $0x18] sm:$0xff] }
 0x372   : > { %v738_v32 = vmul.f32 %v1173_v29, %v737_v31  ;;  %855 = vmatpush.bf16.msra.mxu3 %v1081_v57 }
 0x373   : > { %v534_v61 = vadd.f32 %v1171_v55, %v533_v59  ;;  %v1079_v59 = vld [vmem:[%s1595_s5 + $0x8] sm:$0xff] }
 0x374   : > { %v739_v33 = vadd.f32 %v1173_v29, %v738_v32 }
 0x375   : > { %v538_v63 = vsel %vm537_vm4, %v1171_v55, %v534_v61  ;;  %v785_v61 = vrot.slane %v1481_v4, 1 }
 0x376   : > { %v543_v0 = vsel %vm540_vm5, %v542_v62, %v538_v63  ;;  %856 = vmatpush.bf16.msra.mxu3 %v1080_v58 }
 0x377   : > { %v544_v1 = vmul.f32 %v1518_v5, %v543_v0  ;;  %v1075_v5 = vld [vmem:[%s1593_s3 + $0x8] sm:$0xff] }
 0x378   : > { %723 = vmatpush.bf16.msra.mxu1 %v1075_v5  ;;  %v845_v5 = vrot.slane %v1481_v4, 5 }
 0x379   : > { %v590_v3 = vpack.c.bf16 %v544_v1, %v544_v1 }
 0x37a   : > { %857 = vmatpush.bf16.msra.mxu3 %v1079_v59 }
 0x37b   : > { %1030 = vmatmul.msk.bf16.vlgmr.msrb.gmra.mxu1 %vm402_vm1, %v590_v3 }
 0x37c   : > { %724 = vmatpush.bf16.msra.mxu1 %v1074_v14 }
 0x37e   : > { %858 = vmatpush.bf16.msra.mxu3 %v1078_v60 }
 0x3a9   : > { %v675_v6 = vpop.f32.mrf.mxu0 }
 0x3ab   : > { %v654_v7 = vpop.f32.mrf.mxu3 }
 0x3ac   : > { %684 = vrot.lane.b32.xlu0 %v654_v7, %s1325_s22 }
 0x3b1   : > { %v677_v8 = vpop.f32.mrf.mxu0 }
 0x3b3   : > { %v656_v9 = vpop.f32.mrf.mxu3 }
 0x3c2   : > { %v633_v10 = vpop.f32.mrf.mxu2 }
 0x3c3   : > { %680 = vrot.lane.b32.xlu2 %v633_v10, %s1326_s23 }
 0x3ca   : > { %v635_v11 = vpop.f32.mrf.mxu2 }
 0x3cb   : > { %688 = vrot.lane.b32.xlu2 %v675_v6, %s1327_s30 }
 0x3f8   : > { %v612_v12 = vpop.f32.mrf.mxu1 }
 0x400   : > { %v614_v13 = vpop.f32.mrf.mxu1 }
 0x41d   : > { %v681_v15 = vpop.permute.xlu2 %680 }
 0x41e   : > { %v691_v16 = vsel %vm402_vm1, %v612_v12, %v681_v15  ;;  %v685_v17 = vpop.permute.xlu0 %684  ;;  %vm740_vm1 = vweird.f32 %v1173_v29 }
 0x41f   : > { %v693_v18 = vsel %vm692_vm2, %v691_v16, %v685_v17  ;;  %v1544_v34 = vsel %vm740_vm1, %v1173_v29, %v739_v33  ;;  %v887_v33 = vrot.slane %v1481_v4, 6 }
 0x425   : > { %v689_v19 = vpop.permute.xlu2 %688 }
 0x426   : > { %v695_v20 = vsel %vm694_vm6, %v693_v18, %v689_v19 }
 0x427   : > { %v696_v21 = vpack.c.bf16 %v695_v20, %v695_v20 }
 0x429   : > { %1042 = vmatmul.msk.bf16.vlgmr.msra.gmra.mxu1 %vm362_vm0, %v696_v21 }
 0x4a6   : > { %v726_v23 = vpop.f32.mrf.mxu1 }
 0x4a7   : > { %v727_v24 = vadd.f32 %v726_v23, %v701_v22 }
 0x4a9   : > { %v730_v25 = vadd.f32 %v727_v24, %v1476_v2 }
 0x4ab   : > { %v732_v26 = vsel %vm731_vm7, %v730_v25, 0.0 }
 0x4ac   : > { %733 = vadd.xlane.f32.xlu0 %v732_v26 }
 0x4ae   : > { %v728_v27 = vpop.f32.mrf.mxu1 }
 0x51f   : > { %v734_v35 = vpop.xlane.xlu0 %733 }
 0x520   : > { %v742_v36 = vmul.f32 %v1544_v34, %v734_v35 }
 0x522   : > { %v743_v37 = vsub.f32 %v730_v25, %v742_v36 }
 0x524   : > { %v744_v38 = vmul.f32 %v743_v37, %v743_v37 }
 0x526   : > { %v745_v2 = vsel %vm731_vm7, %v744_v38, 0.0 }
 0x527   : > { %746 = vadd.xlane.f32.xlu2 %v745_v2  ;;  %v343_v2 = vld [vmem:[#allocation6 + $0x8] sm:$0x3] }
 0x59a   : > { %v747_v41 = vpop.xlane.xlu2 %746 }
 0x59b   : > { %v748_v42 = vmul.f32 %v747_v41, %v1544_v34  ;;  %v898_v41 = vrot.slane %v343_v2, 1 }
 0x59d   : > { %v749_v43 = vadd.f32 1e-12, %v748_v42 }
 0x59f   : > { %1174 = vrsqrt.f32 %v749_v43  ;;  %vm756_vm9 = vweird.f32 %v749_v43 }
 0x5a5   : > { %v1175_v44 = vpop.eup %1174 }
 0x5a6   : > { %v751_v45 = vmul.f32 %v1175_v44, %v749_v43  ;;  %vm757_vm8 = vweird.f32 %v1175_v44 }
 0x5a7   : > { %vm758_vm10 = vmor %vm756_vm9, %vm757_vm8 }
 0x5a8   : > { %v752_v46 = vmul.f32 %v1175_v44, %v751_v45 }
 0x5aa   : > { %v753_v47 = vmul.f32 0.5, %v752_v46 }
 0x5ac   : > { %v754_v48 = vsub.f32 1.5, %v753_v47 }
 0x5ae   : > { %v755_v49 = vmul.f32 %v1175_v44, %v754_v48 }
 0x5b0   : > { %v759_v51 = vsel %vm758_vm10, %v1175_v44, %v755_v49 }
 0x5b1   : > { %v760_v53 = vmul.f32 %v759_v51, %v743_v37  ;;  %v890_v37 = vrot.slane %v1481_v4, 7 }
 0x5b3   : > { %v764_v54 = vmul.f32 %v762_v50, %v760_v53 }
 0x5b5   : > { %v767_v55 = vadd.f32 %v765_v52, %v764_v54 }
 0x5b7   : > { %v768_v56 = vpack.c.bf16 %v767_v55, %v767_v55 }
 0x5b9   : > { %1051 = vmatmul.msk.bf16.vlgmr.msra.gmra.mxu2 %vm362_vm0, %v768_v56  ;;  %vm847_vm0 = vcmask 523264  }
 0x63c   : > { %v799_v62 = vpop.f32.mrf.mxu2 }
 0x63d   : > { %v800_v63 = vadd.f32 %v799_v62, %v785_v61 }
 0x63f   : > { %v803_v0 = vmul.f32 %v800_v63, %v800_v63 }
 0x641   : > { %v804_v1 = vmul.f32 %v803_v0, %v800_v63 }
 0x643   : > { %v805_v3 = vmul.f32 0.044715, %v804_v1 }
 0x644   : > { %v801_v6 = vpop.f32.mrf.mxu2 }
 0x645   : > { %v806_v7 = vadd.f32 %v805_v3, %v800_v63 }
 0x647   : > { %v807_v8 = vmul.f32 0.7978846, %v806_v7 }
 0x649   : > { %1176 = vtanh.f32 %v807_v8 }
 0x64f   : > { %v1177_v9 = vpop.eup %1176 }
 0x650   : > { %v809_v10 = vadd.f32 1.0, %v1177_v9 }
 0x652   : > { %v810_v11 = vmul.f32 0.5, %v809_v10 }
 0x654   : > { %v811_v12 = vmul.f32 %v810_v11, %v800_v63 }
 0x656   : > { %v812_v13 = vpack.c.bf16 %v811_v12, %v811_v12 }
 0x658   : > { %1068 = vmatmul.msk.bf16.vlgmr.msra.gmra.mxu3 %vm847_vm0, %v812_v13 }
 0x6db   : > { %v860_v14 = vpop.f32.mrf.mxu3 }
 0x6dc   : > { %v861_v15 = vadd.f32 %v860_v14, %v845_v5 }
 0x6de   : > { %v864_v16 = vadd.f32 %v861_v15, %v767_v55 }
 0x6e0   : > { %v865_v17 = vsel %vm731_vm7, %v864_v16, 0.0 }
 0x6e1   : > { %866 = vadd.xlane.f32.xlu1 %v865_v17 }
 0x6e3   : > { %v862_v18 = vpop.f32.mrf.mxu3 }
 0x754   : > { %v867_v19 = vpop.xlane.xlu1 %866 }
 0x755   : > { %v868_v20 = vmul.f32 %v867_v19, %v1544_v34 }
 0x757   : > { %v869_v21 = vsub.f32 %v864_v16, %v868_v20 }
 0x759   : > { %v870_v22 = vmul.f32 %v869_v21, %v869_v21 }
 0x75b   : > { %v871_v23 = vsel %vm731_vm7, %v870_v22, 0.0 }
 0x75c   : > { %872 = vadd.xlane.f32.xlu1 %v871_v23 }
 0x7cf   : > { %v873_v24 = vpop.xlane.xlu1 %872 }
 0x7d0   : > { %v874_v25 = vmul.f32 %v873_v24, %v1544_v34 }
 0x7d2   : > { %v875_v26 = vadd.f32 1e-12, %v874_v25 }
 0x7d4   : > { %1178 = vrsqrt.f32 %v875_v26  ;;  %vm882_vm12 = vweird.f32 %v875_v26 }
 0x7da   : > { %v1179_v27 = vpop.eup %1178 }
 0x7db   : > { %v877_v28 = vmul.f32 %v1179_v27, %v875_v26  ;;  %vm883_vm11 = vweird.f32 %v1179_v27 }
 0x7dc   : > { %vm884_vm13 = vmor %vm882_vm12, %vm883_vm11 }
 0x7dd   : > { %v878_v29 = vmul.f32 %v1179_v27, %v877_v28 }
 0x7df   : > { %v879_v30 = vmul.f32 0.5, %v878_v29 }
 0x7e1   : > { %v880_v31 = vsub.f32 1.5, %v879_v30 }
 0x7e3   : > { %v881_v32 = vmul.f32 %v1179_v27, %v880_v31 }
 0x7e5   : > { %v885_v35 = vsel %vm884_vm13, %v1179_v27, %v881_v32 }
 0x7e6   : > { %v886_v36 = vmul.f32 %v885_v35, %v869_v21 }
 0x7e8   : > { %v889_v38 = vmul.f32 %v887_v33, %v886_v36 }
 0x7ea   : > { %v892_v34 = vadd.f32 %v890_v37, %v889_v38 }
 0x7ec   : > { %v893_v39 = vmul.f32 %v892_v34, %v343_v2 }
 0x7ee   : > { %v894_v40 = vsel %vm731_vm7, %v893_v39, 0.0 }
 0x7ef   : > { %895 = vadd.xlane.f32.xlu1 %v894_v40 }
 0x862   : > { %v896_v42 = vpop.xlane.xlu1 %895 }
 0x863   : > { %v900_v43 = vadd.f32 %v898_v41, %v896_v42 }
 0x865   : > { %v1069_v44 = vmul.f32 -1.442695, %v900_v43 }
 0x867   : > { %1180 = vpow2.f32 %v1069_v44 }
 0x86d   : > { %v1181_v45 = vpop.eup %1180 }
 0x86e   : > { %v904_v46 = vadd.f32 1.0, %v1181_v45 }
 0x870   : > { %1182 = vrcp.f32 %v904_v46  ;;  %v916_v4 = vand.u32 2147483648, %v904_v46  ;;  %v914_v51 = vand.u32 2147483647, %v904_v46  ;;  %vm910_vm15 = vweird.f32 %v904_v46 }
 0x872   : > { %v917_v53 = vor.u32 1.1754944e-38, %v916_v4  ;;  %vm915_vm5 = vcmp.eq.f32.partialorder %v914_v51, 8.507059e+37 }
 0x876   : > { %v1183_v47 = vpop.eup %1182 }
 0x877   : > { %v906_v48 = vmul.f32 %v1183_v47, %v904_v46  ;;  %vm911_vm14 = vweird.f32 %v1183_v47 }
 0x878   : > { %vm912_vm4 = vmor %vm910_vm15, %vm911_vm14 }
 0x879   : > { %v907_v49 = vsub.f32 1.0, %v906_v48 }
 0x87b   : > { %v908_v50 = vmul.f32 %v1183_v47, %v907_v49 }
 0x87d   : > { %v909_v52 = vadd.f32 %v1183_v47, %v908_v50 }
 0x87f   : > { %v913_v54 = vsel %vm912_vm4, %v1183_v47, %v909_v52 }
 0x880   : > { %v918_v55 = vsel %vm915_vm5, %v917_v53, %v913_v54 }
 0x881   : > { %921 = vst.msk [vmem:[%s339_s20] sm:$0x1] %vm920_vm3, %v918_v55 }
 0x882 PF: > { %p18_p1 = scmp.ge.s32.totalorder %s1410_s21, 4   ;;  %s1601_s24 = smov %s1304_s25 }
 0x883   : > { %s1602_s25 = smov %s1308_s26  ;;  %s1603_s26 = smov %s1422_s28 }
 0x884   : > { %s1604_s27 = smov %s1410_s21  ;;  %20 = sbr.rel (!%p18_p1) target bundleno = 4 (0x4), region = 99 }
 0x889   :  { %939 = vsyncpa [#allocation3], 1 }
 0x88a   :  { %941 = vsyncpa [#allocation3 + $0x1], 1 }
 0x88b   :  { %942 = vsyncpa [#allocation5], 1 }

</bundles_post_ra>
